<compile_context>
chip_gen: v7x
topology: tpu7x:2x2x1
jax: 0.10.0
libtpu: 0.0.40
codegen_flags: <defaults>
</compile_context>

<pallas_src>
import functools

import numpy as np
import jax
import jax.numpy as jnp
from jax.experimental import pallas as pl
from jax.experimental.pallas import tpu as pltpu


_TAPS = [(kh, kw) for kh in range(3) for kw in range(3)]  # tap order == HWIO reshape order


# ----------------------------------------------------------------------------
# pltpu.roll convention probe (one tiny kernel, run once).
# We need y[i] = x[i + delta]; depending on the roll convention that is a roll
# by -delta (jnp.roll-like) or +delta.  Probing removes any ambiguity.
# ----------------------------------------------------------------------------
_ROLL_JNP_LIKE = None


def _roll_is_jnp_like():
    global _ROLL_JNP_LIKE
    if _ROLL_JNP_LIKE is None:
        def k(x_ref, o_ref):
            o_ref[...] = pltpu.roll(x_ref[...], 1, 0)

        x = jnp.tile(jnp.arange(8, dtype=jnp.float32)[:, None], (1, 128))
        y = pl.pallas_call(k, out_shape=jax.ShapeDtypeStruct((8, 128), jnp.float32))(x)
        v = float(y[1, 0])
        if v == 0.0:
            _ROLL_JNP_LIKE = True      # y[i] = x[i - shift]  (jnp.roll convention)
        elif v == 2.0:
            _ROLL_JNP_LIKE = False     # y[i] = x[i + shift]
        else:
            raise RuntimeError(f"unexpected pltpu.roll behaviour (probe value {v})")
    return _ROLL_JNP_LIKE


# ----------------------------------------------------------------------------
# Fused kernel: conv1..conv5 + two maxpools for one block of crops, VMEM resident.
# ----------------------------------------------------------------------------
def _make_kernel(W, roll_jnp_like):
    def shift_rows(x, delta):
        # y[i] = x[(i + delta) % M]; rows that wrap (image / crop borders) are
        # zeroed by the caller's mask or never selected by the pool decimation.
        m = x.shape[0]
        s = (-delta) % m if roll_jnp_like else delta % m
        return pltpu.roll(x, s, 0)

    def conv3x3(x, w_ref, b_ref, mask_ref, row_stride):
        # x: (M, Cin) f32.  w_ref: (9, Cin, Cout) bf16.  mask_ref: (9, M, 1) bf16 0/1.
        acc = None
        for t, (kh, kw) in enumerate(_TAPS):
            delta = (kh - 1) * row_stride + (kw - 1)
            if delta == 0:
                xs = x.astype(jnp.bfloat16)
            else:
                xs = shift_rows(x, delta).astype(jnp.bfloat16) * mask_ref[t]
            term = jnp.dot(xs, w_ref[t], preferred_element_type=jnp.float32)
            acc = term if acc is None else acc + term
        return jnp.maximum(acc + b_ref[...], 0.0)

    def maxpool(x, dec_ref, row_stride):
        # 2x2/stride-2 max pool: window max via two rolls + elementwise max, then
        # a single 0/1 decimation matmul keeping the even-(h,w) anchor rows.
        m = jnp.maximum(x, shift_rows(x, 1))
        m = jnp.maximum(m, shift_rows(m, row_stride))
        return jnp.dot(dec_ref[...], m.astype(jnp.bfloat16),
                       preferred_element_type=jnp.float32)

    def kernel(lhs1_ref, w1_ref, b1_ref, w2_ref, b2_ref, w3_ref, b3_ref,
               w4_ref, b4_ref, w5_ref, b5_ref,
               m16_ref, m8_ref, m4_ref, dec1_ref, dec2_ref,
               fmap_ref, out5_ref):
        # conv1: K=27 im2col built in the wrapper -> one matmul + bias + ReLU
        a1 = jnp.maximum(
            jnp.dot(lhs1_ref[...], w1_ref[...],
                    preferred_element_type=jnp.float32) + b1_ref[...], 0.0)
        a2 = conv3x3(a1, w2_ref, b2_ref, m16_ref, W)               # conv2
        p1 = maxpool(a2, dec1_ref, W)                               # pool1
        a3 = conv3x3(p1, w3_ref, b3_ref, m8_ref, W // 2)            # conv3
        a4 = conv3x3(a3, w4_ref, b4_ref, m8_ref, W // 2)            # conv4 (f_map)
        fmap_ref[...] = a4
        p2 = maxpool(a4, dec2_ref, W // 2)                          # pool2
        out5_ref[...] = conv3x3(p2, w5_ref, b5_ref, m4_ref, W // 4)  # conv5

    return kernel


def _pallas_forward(lhs1, weights, geom, *, H, W, cpb, nblk, roll_jnp_like):
    (w1, b1), (w2, b2), (w3, b3), (w4, b4), (w5, b5) = weights
    m16, m8, m4, dec1, dec2 = geom
    M1 = cpb * H * W
    M2 = M1 // 4
    M3 = M1 // 16
    c4 = w4.shape[-1]
    c5 = w5.shape[-1]
    ops = (w1, b1, w2, b2, w3, b3, w4, b4, w5, b5, m16, m8, m4, dec1, dec2)

    # NOTE: the 15 `ops` are grid-invariant (constant index_map).  At these crop
    # sizes they total ~1.5 MiB, so default double-buffering is immaterial; for
    # much larger crops single-buffer them via pipeline_mode=pl.Buffered(1) and
    # tile the H*W rows with a second grid axis.
    def resident(a):
        nd = a.ndim
        return pl.BlockSpec(a.shape, lambda g, _n=nd: (0,) * _n)

    return pl.pallas_call(
        _make_kernel(W, roll_jnp_like),
        out_shape=(jax.ShapeDtypeStruct((nblk * M2, c4), jnp.float32),
                   jax.ShapeDtypeStruct((nblk * M3, c5), jnp.float32)),
        grid=(nblk,),
        in_specs=[pl.BlockSpec((M1, lhs1.shape[-1]), lambda g: (g, 0))]
                + [resident(a) for a in ops],
        out_specs=(pl.BlockSpec((M2, c4), lambda g: (g, 0)),
                   pl.BlockSpec((M3, c5), lambda g: (g, 0))),
        compiler_params=pltpu.CompilerParams(
            dimension_semantics=("parallel",),
            vmem_limit_bytes=32 * 1024 * 1024),
    )(lhs1, *ops)


# ----------------------------------------------------------------------------
# Constant packing (done once / cached).
# ----------------------------------------------------------------------------
def _pack_weights(params):
    """HWIO (3,3,Cin,Cout) -> conv1: (27,64); conv2..5: (9,Cin,Cout); biases (1,Cout)."""
    packed = []
    for li, (w, b) in enumerate(params):
        w = np.asarray(w, np.float32)
        b = np.asarray(b, np.float32).reshape(1, -1)
        if li == 0:
            wk = w.reshape(9 * w.shape[2], w.shape[3])        # tap-major, channel-minor
        else:
            wk = w.reshape(9, w.shape[2], w.shape[3])
        packed.append((jnp.asarray(wk, jnp.bfloat16), jnp.asarray(b, jnp.float32)))
    return packed


def _tap_masks(H, W, cpb):
    """mask[t, row, 0] = 1 iff tap t of a 3x3 SAME conv is inside the crop."""
    hh, ww = np.meshgrid(np.arange(H), np.arange(W), indexing="ij")
    m = np.zeros((9, H * W, 1), np.float32)
    for t, (kh, kw) in enumerate(_TAPS):
        valid = ((hh + kh - 1 >= 0) & (hh + kh - 1 < H) &
                 (ww + kw - 1 >= 0) & (ww + kw - 1 < W))
        m[t, :, 0] = valid.reshape(-1).astype(np.float32)
    return np.tile(m, (1, cpb, 1))


def _decimation(H, W, cpb):
    """0/1 matrix selecting the even-(h,w) anchor rows of each crop (2x2/stride-2)."""
    Ho, Wo = H // 2, W // 2
    d = np.zeros((cpb * Ho * Wo, cpb * H * W), np.float32)
    for n in range(cpb):
        for i in range(Ho):
            for j in range(Wo):
                d[n * Ho * Wo + i * Wo + j, n * H * W + (2 * i) * W + (2 * j)] = 1.0
    return d


def _geom_constants(H, W, cpb):
    m16 = jnp.asarray(_tap_masks(H, W, cpb), jnp.bfloat16)
    m8 = jnp.asarray(_tap_masks(H // 2, W // 2, cpb), jnp.bfloat16)
    m4 = jnp.asarray(_tap_masks(H // 4, W // 4, cpb), jnp.bfloat16)
    dec1 = jnp.asarray(_decimation(H, W, cpb), jnp.bfloat16)
    dec2 = jnp.asarray(_decimation(H // 2, W // 2, cpb), jnp.bfloat16)
    return (m16, m8, m4, dec1, dec2)


# ----------------------------------------------------------------------------
# Batched forward (jitted): NCHW crops -> (f_map NCHW, out5 NCHW)
# ----------------------------------------------------------------------------
def _build_lhs1(x_nchw, H, W):
    # conv1 im2col in the wrapper: fold the 9 taps of the tiny RGB input into K=27.
    x = jnp.transpose(x_nchw, (0, 2, 3, 1)).astype(jnp.bfloat16)   # NHWC bf16
    xp = jnp.pad(x, ((0, 0), (1, 1), (1, 1), (0, 0)))
    taps = [xp[:, kh:kh + H, kw:kw + W, :] for kh, kw in _TAPS]
    n, _, _, c = x.shape
    return jnp.concatenate(taps, axis=-1).reshape(n * H * W, 9 * c)


@functools.partial(jax.jit, static_argnames=("H", "W", "cpb", "nblk", "roll_jnp_like"))
def _batched_forward(x_nchw, weights, geom, *, H, W, cpb, nblk, roll_jnp_like):
    lhs1 = _build_lhs1(x_nchw, H, W)
    fmap, out5 = _pallas_forward(lhs1, weights, geom, H=H, W=W, cpb=cpb,
                                 nblk=nblk, roll_jnp_like=roll_jnp_like)
    npad = nblk * cpb
    fmap = fmap.reshape(npad, H // 2, W // 2, fmap.shape[-1])
    out5 = out5.reshape(npad, H // 4, W // 4, out5.shape[-1])
    return jnp.transpose(fmap, (0, 3, 1, 2)), jnp.transpose(out5, (0, 3, 1, 2))


# ----------------------------------------------------------------------------
# Content_Reconstructor.forward equivalent
# ----------------------------------------------------------------------------
class ContentReconstructor:
    """Pallas-TPU port of Content_Reconstructor.forward (VGG16 conv1..conv5 prefix).

    forward() stores self.f_maps (post-ReLU conv4 per crop, NCHW with dummy batch
    dim) like the torch module, and also returns (f_maps, out5_list).
    All crops are assumed to share one spatial size divisible by 4.
    """

    def __init__(self, params):
        self._weights = _pack_weights(params)   # packed once, reused across calls
        self._geom_cache = {}                   # (H, W, crops_per_block) -> constants
        self.f_maps = []

    def forward(self, crop_content_list):
        crops = [jnp.asarray(c, jnp.float32) for c in crop_content_list]
        x = jnp.concatenate(crops, axis=0)                          # (N, 3, H, W)
        n, _, h, w = (int(d) for d in x.shape)
        assert h % 4 == 0 and w % 4 == 0, "crop spatial dims must be divisible by 4"

        # <= 2 crop super-blocks: crops are batched into the matmul M dimension;
        # two grid steps (when enough crops) keep both v7x TensorCores busy.
        if n >= 4:
            nblk, cpb = 2, -(-n // 2)
        else:
            nblk, cpb = 1, n
        npad = nblk * cpb
        if npad != n:
            x = jnp.concatenate(
                [x, jnp.zeros((npad - n,) + x.shape[1:], x.dtype)], axis=0)

        key = (h, w, cpb)
        if key not in self._geom_cache:
            self._geom_cache[key] = _geom_constants(h, w, cpb)
        geom = self._geom_cache[key]

        fmap, out5 = _batched_forward(x, self._weights, geom, H=h, W=w, cpb=cpb,
                                      nblk=nblk, roll_jnp_like=_roll_is_jnp_like())
        self.f_maps = [fmap[i:i + 1] for i in range(n)]
        out5_list = [out5[i:i + 1] for i in range(n)]
        return self.f_maps, out5_list

    __call__ = forward

    # TODO(synk): Content_Reconstructor.restore() is an Adam optimization loop over
    # input pixels (training, not a forward pass) and model_construct() is torch
    # module surgery -- out of scope for a forward-pass kernel port.


# ----------------------------------------------------------------------------
# Synthetic deterministic parameters (shapes match VGG16 features[0..10], HWIO)
# ----------------------------------------------------------------------------
def init_params(key):
    dims = [(3, 64), (64, 64), (64, 128), (128, 128), (128, 256)]
    params = []
    for (cin, cout) in dims:
        key, kw, kb = jax.random.split(key, 3)
        w = 0.05 * jax.random.normal(kw, (3, 3, cin, cout), jnp.float32)  # HWIO
        b = 0.01 * jax.random.normal(kb, (cout,), jnp.float32)
        params.append((w, b))
    return params


# ----------------------------------------------------------------------------
# Pure-JAX reference (same bf16-input / f32-accumulation numerics)
# ----------------------------------------------------------------------------
def _reference_forward(x_nchw, params):
    def conv(h, w, b):
        y = jax.lax.conv_general_dilated(
            h.astype(jnp.bfloat16), jnp.asarray(w, jnp.bfloat16),
            window_strides=(1, 1), padding="SAME",
            dimension_numbers=("NHWC", "HWIO", "NHWC"),
            preferred_element_type=jnp.float32)
        return jnp.maximum(y + b, 0.0)

    def pool(h):
        return jax.lax.reduce_window(h, -jnp.inf, jax.lax.max,
                                     (1, 2, 2, 1), (1, 2, 2, 1), "VALID")

    (w1, b1), (w2, b2), (w3, b3), (w4, b4), (w5, b5) = params
    x = jnp.transpose(x_nchw, (0, 2, 3, 1))
    o = conv(x, w1, b1)
    o = conv(o, w2, b2)
    o = pool(o)
    o = conv(o, w3, b3)
    o4 = conv(o, w4, b4)
    o5 = conv(pool(o4), w5, b5)
    return jnp.transpose(o4, (0, 3, 1, 2)), jnp.transpose(o5, (0, 3, 1, 2))


if __name__ == "__main__":
    key = jax.random.PRNGKey(0)
    key, k_params = jax.random.split(key)
    params = init_params(k_params)

    # Two crops, each (1, 3, 16, 16) NCHW, as the torch module expects.
    crops = []
    for _ in range(2):
        key, kc = jax.random.split(key)
        crops.append(jax.random.normal(kc, (1, 3, 16, 16), jnp.float32))

    model = ContentReconstructor(params)
    f_maps, out5s = model.forward(crops)
    for fm, o5 in zip(f_maps, out5s):
        jax.block_until_ready(fm)
        jax.block_until_ready(o5)
        assert fm.shape == (1, 128, 8, 8)
        assert o5.shape == (1, 256, 4, 4)

    # Numerical check against a pure-JAX reference with matching precision.
    x = jnp.concatenate(crops, axis=0)
    ref_fm, ref_o5 = _reference_forward(x, params)
    np.testing.assert_allclose(np.asarray(jnp.concatenate(f_maps, axis=0)),
                               np.asarray(ref_fm), rtol=5e-2, atol=2e-2)
    np.testing.assert_allclose(np.asarray(jnp.concatenate(out5s, axis=0)),
                               np.asarray(ref_o5), rtol=5e-2, atol=2e-2)

    print("KERNEL_OK")
</pallas_src>

<mosaic_0001>
module attributes {stable_mosaic.version = 11 : i64} {
  func.func @k(%arg0: memref<8x128xf32, #tpu.memory_space<vmem>>, %arg1: memref<8x128xf32, #tpu.memory_space<vmem>>) attributes {dimension_semantics = [], scalar_prefetch = 0 : i64, scratch_operands = 0 : i64, tpu.core_type = #tpu.core_type<tc>} {
    %c0 = arith.constant 0 : index
    %c0_0 = arith.constant 0 : index
    %0 = vector.load %arg0[%c0, %c0_0] : memref<8x128xf32, #tpu.memory_space<vmem>>, vector<8x128xf32>
    %c1_i32 = arith.constant 1 : i32
    %1 = tpu.dynamic_rotate %0 by %c1_i32 dim 0 : vector<8x128xf32>, i32 -> vector<8x128xf32>
    %c0_1 = arith.constant 0 : index
    %c0_2 = arith.constant 0 : index
    %2 = vector.load %arg1[%c0_1, %c0_2] : memref<8x128xf32, #tpu.memory_space<vmem>>, vector<8x128xf32>
    tpu.vector_store %arg1[%c0_1, %c0_2], %1 {strides = array<i32>} : memref<8x128xf32, #tpu.memory_space<vmem>>, vector<8x128xf32>,
    return
  }
}

</mosaic_0001>

<bundles_post_ra>
// kernel: tpu_custom_call.1
= control target key start
LH: loop header
LB: loop body
LE: loop exit
PB: predicated region body
PF: predicated region fallthrough
CT: control target
= control target key end

     0   :  { %6 = vsyncpa [#allocation3], 0  ;;  %s125_s0 = inlined_call_operand.hbm [shape: f32[8,128], index: 0, kind: input, shape index: {}]   ;;  %s126_s1 = inlined_call_operand.hbm [shape: f32[8,128], index: 1, kind: output, shape index: {}]  }
   0x1   :  { %7 = vsyncpa [#allocation4], 0  ;;  %s89_s6 = smov [#allocation2]   ;;  %s41_s10 = scalar_lea.hbm %s125_s0, 128 }
   0x2   :  { %s14_s7 = sshll.u32 %s89_s6, 4  ;;  %p42_p0 = scmp.ne.s32.totalorder %s125_s0, %s41_s10  ;;  %s15_s7 = int_to_ptr.vmem [resolvable:$true] %s14_s7 }
   0x3   :  { %p45_p1 = scmp.lt.u32.totalorder %s41_s10, %s125_s0 }
   0x5   :  { %p47_p2 = pnand %p45_p1, %p42_p0 }
   0x7   :  { %50 = shalt.err (!%p47_p2)
}
   0x8   :  { %s51_s15 = scalar_lea.vmem %s15_s7, 128  ;;  %p56_p4 = scmp.lt.s32.totalorder %s15_s7, %s15_s7 }
   0x9   :  { %p52_p3 = scmp.ne.s32.totalorder %s15_s7, %s51_s15  ;;  %p57_p5 = scmp.lt.s32.totalorder %s51_s15, %s51_s15 }
   0xb   :  { %p58_p6 = por %p57_p5, %p56_p4 }
   0xd   :  { %p59_p7 = pnand %p58_p6, %p52_p3 }
   0xf   :  { %62 = shalt.err (!%p59_p7)
}
  0x10   :  { %17 = dma.hbm_to_vmem [thread:$0]  %s125_s0, 128, %s15_s7, [#allocation3]  }
  0x11   :  { %85 = dma.done.wait [#allocation3], 128  }
  0x12   :  { %86 = vsyncadd [#allocation3], 4294967168  ;;  %s90_s18 = smov [#allocation5]   ;;  %v21_v0 = vld [vmem:[#allocation2] sm:$0xff] }
  0x13   :  { %s30_s19 = sshll.u32 %s90_s18, 4  ;;  %v22_v1 = vrot.slane %v21_v0, 7  ;;  %s31_s19 = int_to_ptr.vmem [resolvable:$true] %s30_s19 }
  0x14   :  { %s63_s20 = scalar_lea.vmem %s31_s19, 128  ;;  %p68_p9 = scmp.lt.s32.totalorder %s31_s19, %s31_s19 }
  0x15   :  { %23 = vst [vmem:[#allocation5] sm:$0xff] %v22_v1  ;;  %p64_p8 = scmp.ne.s32.totalorder %s31_s19, %s63_s20  ;;  %p69_p10 = scmp.lt.s32.totalorder %s63_s20, %s63_s20 }
  0x17   :  { %p70_p11 = por %p69_p10, %p68_p9 }
  0x19   :  { %p71_p12 = pnand %p70_p11, %p64_p8 }
  0x1b   :  { %74 = shalt.err (!%p71_p12)
}
  0x1c   :  { %s75_s23 = scalar_lea.hbm %s126_s1, 128 }
  0x1d   :  { %p76_p13 = scmp.ne.s32.totalorder %s126_s1, %s75_s23  ;;  %p79_p0 = scmp.lt.u32.totalorder %s75_s23, %s126_s1 }
  0x1f   :  { %p81_p1 = pnand %p79_p0, %p76_p13 }
  0x21   :  { %84 = shalt.err (!%p81_p1)
}
  0x22   :  { %33 = dma.vmem_to_hbm [thread:$0]  %s31_s19, 128, %s126_s1, [#allocation4]  }
  0x23   :  { %87 = dma.done.wait [#allocation4], 128  }
  0x24   :  { %88 = vsyncadd [#allocation4], 4294967168 }
  0x25   :  { %37 = vsyncpa [#allocation3], 1 }
  0x26   :  { %38 = vsyncpa [#allocation4], 1 }

</bundles_post_ra>
